<compile_context>
chip_gen: v7x
topology: tpu7x:2x2x1
jax: 0.10.0
libtpu: 0.0.40
codegen_flags: <defaults>
</compile_context>

<pallas_src>
import functools

import jax
import jax.numpy as jnp
from jax.experimental import pallas as pl
from jax.experimental.pallas import tpu as pltpu


def _ordinal_head_kernel(x_ref, w_ref, o_ref, *, precision):
    # x_ref: (TM, pack*K) packed activation tile; w_ref: (pack*K, pack*N)
    # block-diagonal replicated weight, resident in VMEM across all tiles.
    o_ref[...] = jnp.dot(
        x_ref[...],
        w_ref[...],
        preferred_element_type=jnp.float32,
        precision=precision,
    ).astype(o_ref.dtype)


_TARGET_TILE_BYTES = 8 * 1024 * 1024      # HBM bytes of x per grid step
_MIN_SPLIT_TILE_BYTES = 2 * 1024 * 1024   # don't split below this per-tile size
_MIN_TILES = 4                            # >=2 tiles per v7x TensorCore


def _pick_block_rows(n_rows, n_cols, dtype_bytes):
    """Rows (of the packed layout) per x tile.

    Accounts for the (8, 128) VMEM tiling: the last dim is padded to a
    multiple of 128 lanes, so bytes/row = ceil(n_cols/128)*128 * dtype_bytes.
    Targets ~8 MiB of x per tile, but caps the tile so that large batches
    are split into at least _MIN_TILES grid steps (double-buffering overlap
    + megacore sharding), as long as each tile still carries >= 2 MiB.
    """
    lane_cols = -(-n_cols // 128) * 128
    row_bytes = lane_cols * dtype_bytes
    rows = max(8, (_TARGET_TILE_BYTES // row_bytes) // 8 * 8)
    cap = (n_rows // _MIN_TILES) // 8 * 8
    if cap >= 8 and cap * row_bytes >= _MIN_SPLIT_TILE_BYTES:
        rows = min(rows, cap)
    return min(rows, n_rows)


def ordinal_regression_head(x, weight, *, block_rows=None,
                            precision=jax.lax.Precision.DEFAULT):
    """Forward pass of OrdinalRegressionHead (bias=False).

    Args:
      x:      (batch, in_features) activations.
      weight: (num_classes - 1, in_features) — PyTorch Linear layout.
      block_rows: optional override of the batch tile size, in rows of the
        *packed* layout (each packed row holds `128 // in_features` samples
        when in_features divides 128, else 1 sample).
      precision: MXU precision. DEFAULT = 1 bf16 pass (HBM-bound);
        HIGHEST = exact fp32 (3-6 MXU passes, slower).

    Returns:
      (batch, num_classes - 1) cut-point logits, same dtype as x.
    """
    assert x.ndim == 2, "expected (batch, in_features) input"
    batch, in_features = x.shape
    out_features, k2 = weight.shape
    assert k2 == in_features, "weight must be (num_classes-1, in_features)"

    dtype_bytes = jnp.dtype(x.dtype).itemsize

    # --- K-packing: fold `pack` consecutive samples into one 128-lane row. ---
    if in_features <= 128 and 128 % in_features == 0:
        pack = 128 // in_features
    else:
        pack = 1

    pad = (-batch) % pack
    padded_batch = batch + pad
    if pad:
        x = jnp.concatenate(
            [x, jnp.zeros((pad, in_features), dtype=x.dtype)], axis=0)

    packed_rows = padded_batch // pack
    packed_k = pack * in_features
    packed_n = pack * out_features

    x_packed = x.reshape(packed_rows, packed_k)          # row-major: free

    # Block-diagonal replicated weight: block p (p=0..pack-1) is W.T.
    wt = weight.T.astype(x.dtype)                        # (K, N) — tiny
    if pack > 1:
        eye = jnp.eye(pack, dtype=x.dtype)
        w_packed = jnp.einsum("pq,kn->pkqn", eye, wt).reshape(packed_k, packed_n)
    else:
        w_packed = wt

    # --- tiling ---
    if block_rows is not None:
        tm = min(block_rows, packed_rows)
    else:
        tm = _pick_block_rows(packed_rows, packed_k, dtype_bytes)
    grid = (pl.cdiv(packed_rows, tm),)

    cost = pl.CostEstimate(
        flops=2 * packed_rows * packed_k * packed_n,
        transcendentals=0,
        bytes_accessed=dtype_bytes * (packed_rows * packed_k
                                      + packed_k * packed_n
                                      + packed_rows * packed_n),
    )

    kernel = functools.partial(_ordinal_head_kernel, precision=precision)

    out_packed = pl.pallas_call(
        kernel,
        out_shape=jax.ShapeDtypeStruct((packed_rows, packed_n), x.dtype),
        grid_spec=pltpu.PrefetchScalarGridSpec(
            num_scalar_prefetch=0,
            grid=grid,
            in_specs=[
                # x: one packed batch tile per grid step, double-buffered.
                pl.BlockSpec((tm, packed_k), lambda i: (i, 0)),
                # weight: full block-diagonal array, constant index map ->
                # stays resident in VMEM across all batch tiles.
                pl.BlockSpec((packed_k, packed_n), lambda i: (0, 0)),
            ],
            out_specs=pl.BlockSpec((tm, packed_n), lambda i: (i, 0)),
        ),
        compiler_params=pltpu.CompilerParams(
            # Batch tiles are independent -> shard across TensorCores (v7x).
            dimension_semantics=("parallel",),
            # Explicit budget: 2x in + 2x out (both 128-lane padded) + weight
            # at 8 MiB tiles is ~33 MiB; 48 MiB fits v5e/v6e (128 MiB phys)
            # and v7x (64 MiB phys) with headroom.
            vmem_limit_bytes=48 * 1024 * 1024,
        ),
        cost_estimate=cost,
    )(x_packed, w_packed)

    out = out_packed.reshape(padded_batch, out_features)
    if pad:
        out = out[:batch]
    return out


if __name__ == "__main__":
    # Small shapes consistent with the module:
    #   batch=8, in_features=32, num_classes=5 -> logits dim = 4
    batch, in_features, num_classes = 8, 32, 5
    out_features = num_classes - 1

    key = jax.random.PRNGKey(0)
    kx, kw, kx2 = jax.random.split(key, 3)

    x = jax.random.normal(kx, (batch, in_features), dtype=jnp.float32)
    # Deterministic init mimicking nn.Linear's uniform(-1/sqrt(fan_in), 1/sqrt(fan_in))
    bound = 1.0 / jnp.sqrt(jnp.float32(in_features))
    weight = jax.random.uniform(
        kw, (out_features, in_features), dtype=jnp.float32,
        minval=-bound, maxval=bound,
    )

    # Single bf16 MXU pass (Precision.DEFAULT) vs the fp32 reference:
    # tolerance loosened accordingly (review: correctness_concerns[1]).
    TOL = dict(atol=2e-2, rtol=2e-2)

    # 1) default tiling (single packed tile at this batch size; pack = 4).
    out = ordinal_regression_head(x, weight)
    jax.block_until_ready(out)
    ref = x @ weight.T
    assert out.shape == (batch, out_features)
    assert jnp.allclose(out, ref, **TOL)

    # 2) exercise the multi-step batch-tiled grid path: batch=128 -> 32 packed
    #    rows; block_rows=8 -> grid=(4,).
    batch2 = 128
    x2 = jax.random.normal(kx2, (batch2, in_features), dtype=jnp.float32)
    out2 = ordinal_regression_head(x2, weight, block_rows=8)
    jax.block_until_ready(out2)
    ref2 = x2 @ weight.T
    assert out2.shape == (batch2, out_features)
    assert jnp.allclose(out2, ref2, **TOL)

    # 3) exact-fp32 path still available (Precision.HIGHEST) for parity checks.
    out3 = ordinal_regression_head(x, weight, precision=jax.lax.Precision.HIGHEST)
    jax.block_until_ready(out3)
    assert jnp.allclose(out3, ref, atol=1e-5, rtol=1e-5)

    print("KERNEL_OK")
</pallas_src>

<mosaic_0001>
module attributes {stable_mosaic.version = 11 : i64} {
  func.func @_ordinal_head_kernel(%arg0: i32, %arg1: memref<2x128xf32, #tpu.memory_space<vmem>>, %arg2: memref<128x16xf32, #tpu.memory_space<vmem>>, %arg3: memref<2x16xf32, #tpu.memory_space<vmem>>) attributes {dimension_semantics = [#tpu.dimension_semantics<parallel>], iteration_bounds = array<i64: 1>, scalar_prefetch = 0 : i64, scratch_operands = 0 : i64, tpu.core_type = #tpu.core_type<tc>, window_params = [{transform_indices = @transform_0, window_bounds = array<i64: 2, 128>}, {pipeline_mode = #tpu.pipeline_mode<synchronous>, transform_indices = @transform_1, window_bounds = array<i64: 128, 16>}, {transform_indices = @transform_2, window_bounds = array<i64: 2, 16>}]} {
    %c0 = arith.constant 0 : index
    %c0_0 = arith.constant 0 : index
    %0 = vector.load %arg1[%c0, %c0_0] : memref<2x128xf32, #tpu.memory_space<vmem>>, vector<2x128xf32>
    %c0_1 = arith.constant 0 : index
    %c0_2 = arith.constant 0 : index
    %1 = vector.load %arg2[%c0_1, %c0_2] : memref<128x16xf32, #tpu.memory_space<vmem>>, vector<128x16xf32>
    %cst = arith.constant dense<0.000000e+00> : vector<2x16xf32>
    %2 = tpu.matmul %0, %1, %cst {dimension_numbers = #tpu.dot_dimension_numbers<[1], [0], [0], [1], [0, 0, 1, 1], [], []>} : vector<2x128xf32>, vector<128x16xf32>, vector<2x16xf32> -> vector<2x16xf32>
    %c0_3 = arith.constant 0 : index
    %c0_4 = arith.constant 0 : index
    %3 = vector.load %arg3[%c0_3, %c0_4] : memref<2x16xf32, #tpu.memory_space<vmem>>, vector<2x16xf32>
    tpu.vector_store %arg3[%c0_3, %c0_4], %2 {strides = array<i32>} : memref<2x16xf32, #tpu.memory_space<vmem>>, vector<2x16xf32>,
    return
  }
  func.func @transform_0(%arg0: i32) -> (i32, i32) {
    %c0_i32 = arith.constant 0 : i32
    %c0_i32_0 = arith.constant 0 : i32
    return %arg0, %c0_i32 : i32, i32
  }
  func.func @transform_1(%arg0: i32) -> (i32, i32) {
    %c0_i32 = arith.constant 0 : i32
    %c0_i32_0 = arith.constant 0 : i32
    %c0_i32_1 = arith.constant 0 : i32
    return %c0_i32, %c0_i32_0 : i32, i32
  }
  func.func @transform_2(%arg0: i32) -> (i32, i32) {
    %c0_i32 = arith.constant 0 : i32
    %c0_i32_0 = arith.constant 0 : i32
    return %arg0, %c0_i32 : i32, i32
  }
}

</mosaic_0001>

<bundles_post_ra>
// kernel: tpu_custom_call.1
= control target key start
LH: loop header
LB: loop body
LE: loop exit
PB: predicated region body
PF: predicated region fallthrough
CT: control target
= control target key end

     0   :  { %v219_v3 = vmov 0.0|0.0   ;;  %vm220_vm0 = vmmov 0   ;;  %v221_v6 = vmov 0.0   ;;  %s301_s0 = inlined_call_operand.vmem [shape: f32[2,128], index: 0, kind: input, shape index: {}]   ;;  %s302_s1 = inlined_call_operand.vmem [shape: f32[128,16], index: 1, kind: input, shape index: {}]   ;;  %s303_s2 = inlined_call_operand.hbm [shape: f32[2,16], index: 2, kind: output, shape index: {}]  }
   0x1   :  { %v13_v0 = vld [vmem:[%s302_s1] sm:$0xff]  ;;  %v14_v1 = vld [vmem:[%s302_s1 + $0x8] sm:$0xff]  ;;  %v15_v2 = vld [vmem:[%s302_s1 + $0x10] sm:$0xff]  ;;  %167 = vmatprep.subr.bf16.mxu0 %v219_v3  ;;  %164 = vmatprep.mubr.msk.f32.mxu0 %vm220_vm0, %v221_v6 }
   0x2   :  { %v168_v4 = vpack.c.bf16 %v14_v1, %v13_v0  ;;  %v16_v5 = vld [vmem:[%s302_s1 + $0x18] sm:$0xff]  ;;  %v17_v8 = vld [vmem:[%s302_s1 + $0x20] sm:$0xff]  ;;  %v18_v9 = vld [vmem:[%s302_s1 + $0x28] sm:$0xff] }
   0x3   :  { %v171_v7 = vpack.c.bf16 %v16_v5, %v15_v2 }
   0x4   :  { %169 = vmatpush3.bf16.msra.mxu0 %v168_v4 }
   0x5   :  { %170 = vmatprep.subr.bf16.mxu0 %v219_v3 }
   0x6   :  { %7 = vsyncpa [#allocation3], 0  ;;  %v174_v10 = vpack.c.bf16 %v18_v9, %v17_v8  ;;  %v19_v11 = vld [vmem:[%s302_s1 + $0x30] sm:$0xff]  ;;  %v20_v12 = vld [vmem:[%s302_s1 + $0x38] sm:$0xff]  ;;  %s222_s15 = smov [#allocation2]   ;;  %vm99_vm1 = vcmask 123904  }
   0x7   :  { %v177_v13 = vpack.c.bf16 %v20_v12, %v19_v11  ;;  %v21_v14 = vld [vmem:[%s302_s1 + $0x40] sm:$0xff]  ;;  %v22_v15 = vld [vmem:[%s302_s1 + $0x48] sm:$0xff]  ;;  %v23_v17 = vld [vmem:[%s302_s1 + $0x50] sm:$0xff]  ;;  %s107_s16 = sshll.u32 %s222_s15, 4  ;;  %s108_s16 = int_to_ptr.vmem [resolvable:$true] %s107_s16 }
   0x8   :  { %172 = vmatpush3.bf16.msra.mxu0 %v171_v7  ;;  %v180_v16 = vpack.c.bf16 %v22_v15, %v21_v14  ;;  %v24_v18 = vld [vmem:[%s302_s1 + $0x58] sm:$0xff]  ;;  %v25_v20 = vld [vmem:[%s302_s1 + $0x60] sm:$0xff]  ;;  %v26_v21 = vld [vmem:[%s302_s1 + $0x68] sm:$0xff]  ;;  %s195_s17 = scalar_lea.vmem %s108_s16, 32  ;;  %p200_p1 = scmp.lt.s32.totalorder %s108_s16, %s108_s16 }
   0x9   :  { %173 = vmatprep.subr.bf16.mxu0 %v219_v3  ;;  %v183_v19 = vpack.c.bf16 %v24_v18, %v23_v17  ;;  %v186_v22 = vpack.c.bf16 %v26_v21, %v25_v20  ;;  %v27_v23 = vld [vmem:[%s302_s1 + $0x70] sm:$0xff]  ;;  %v28_v24 = vld [vmem:[%s302_s1 + $0x78] sm:$0xff]  ;;  %v12_v26 = vld [vmem:[%s301_s0] sm:$0x3]  ;;  %p196_p0 = scmp.ne.s32.totalorder %s108_s16, %s195_s17  ;;  %p201_p2 = scmp.lt.s32.totalorder %s195_s17, %s195_s17 }
   0xa   :  { %v189_v25 = vpack.c.bf16 %v28_v24, %v27_v23 }
   0xb   :  { %p202_p3 = por %p201_p2, %p200_p1 }
   0xc   :  { %175 = vmatpush3.bf16.msra.mxu0 %v174_v10 }
   0xd   :  { %176 = vmatprep.subr.bf16.mxu0 %v219_v3  ;;  %p203_p4 = pnand %p202_p3, %p196_p0 }
  0x10   :  { %178 = vmatpush3.bf16.msra.mxu0 %v177_v13 }
  0x11   :  { %179 = vmatprep.subr.bf16.mxu0 %v219_v3 }
  0x14   :  { %181 = vmatpush3.bf16.msra.mxu0 %v180_v16 }
  0x15   :  { %182 = vmatprep.subr.bf16.mxu0 %v219_v3 }
  0x18   :  { %184 = vmatpush3.bf16.msra.mxu0 %v183_v19 }
  0x19   :  { %185 = vmatprep.subr.bf16.mxu0 %v219_v3 }
  0x1c   :  { %187 = vmatpush3.bf16.msra.mxu0 %v186_v22 }
  0x1d   :  { %188 = vmatprep.subr.bf16.mxu0 %v219_v3 }
  0x20   :  { %190 = vmatpush3.bf16.msra.mxu0 %v189_v25 }
  0x23   :  { %165 = vmatmul.mubr.f32.vlgmr.msra.gmra.mrb[0].mxu0 %v12_v26 }
  0xf6   :  { %v95_v27 = vpop.f32.mrb[0].mxu0 }
  0xf7   :  { %100 = vst.msk [vmem:[#allocation2] sm:$0x3] %vm99_vm1, %v95_v27  ;;  %v166_v28 = vpop.f32.mrb[1].mxu0 }
  0xf8   :  { %206 = shalt.err (!%p203_p4)
}
  0xf9   :  { %s207_s19 = scalar_lea.hbm %s303_s2, 32 }
  0xfa   :  { %p208_p5 = scmp.ne.s32.totalorder %s303_s2, %s207_s19  ;;  %p211_p6 = scmp.lt.u32.totalorder %s207_s19, %s303_s2 }
  0xfc   :  { %p213_p7 = pnand %p211_p6, %p208_p5 }
  0xfe   :  { %216 = shalt.err (!%p213_p7)
}
  0xff   :  { %110 = dma.vmem_to_hbm [thread:$0]  %s108_s16, 32, %s303_s2, [#allocation3]  }
 0x100   :  { %217 = dma.done.wait [#allocation3], 32  }
 0x101   :  { %218 = vsyncadd [#allocation3], 4294967264 }
 0x102   :  { %114 = vsyncpa [#allocation3], 1 }

</bundles_post_ra>
